<compile_context>
chip_gen: v7x
topology: tpu7x:2x2x1
jax: 0.10.0
libtpu: 0.0.40
codegen_flags: <defaults>
</compile_context>

<pallas_src>
import jax
import jax.numpy as jnp
from jax.experimental import pallas as pl
from jax.experimental.pallas import tpu as pltpu


def _identity_copy_kernel(x_ref, o_ref):
    # Elementwise identity on one lane-dense row tile.
    o_ref[...] = x_ref[...]


_LANE_CANDIDATES = (512, 256, 128)  # lane-dense last dim (multiple of 128)
_BLOCK_ROW_CANDIDATES = (4096, 2048, 1024, 512, 256, 128, 64, 32, 16, 8)


def _min_rows_for_dtype(dtype):
    """Native sublane-tile height: 8 for f32, 16 for bf16/f16, 32 for int8/fp8."""
    itemsize = jnp.dtype(dtype).itemsize
    packing = max(1, 4 // max(1, itemsize))
    return 8 * packing


def _tpu_generation():
    try:
        kind = jax.devices()[0].device_kind.lower()
    except Exception:
        return None
    if "v7" in kind:
        return "v7"
    if "v6" in kind:
        return "v6"
    return None  # v5e / unknown -> conservative


def _block_budget(gen):
    """(max_block_bytes, vmem_limit_bytes or None) per TPU generation."""
    if gen in ("v6", "v7"):
        # 4 buffers (double-buffered in+out) x 8 MiB = 32 MiB; raise scoped VMEM.
        return 8 * 1024 * 1024, 40 * 1024 * 1024
    # v5e scoped-VMEM default is 16 MiB; 2 MiB blocks already ~88% of roofline.
    return 2 * 1024 * 1024, None


def _choose_flat_shape(total, min_rows):
    """Pick a lane-dense (rows, lane) factorization of `total`, or None."""
    for lane in _LANE_CANDIDATES:
        if total % lane == 0:
            rows = total // lane
            if rows >= min_rows and rows % min_rows == 0:
                return rows, lane
    return None


def _choose_block_rows(rows, lane, itemsize, min_rows, max_block_bytes, min_tiles):
    """Largest dtype-aligned row tile dividing `rows` that fits the VMEM budget,
    preferring block sizes that leave >= min_tiles grid steps (keeps both v7x
    TensorCores streaming and the prefetch/writeback pipeline full)."""
    max_rows_by_vmem = max(min_rows, max_block_bytes // (lane * itemsize))
    candidates = [c for c in _BLOCK_ROW_CANDIDATES
                  if c >= min_rows and c % min_rows == 0]
    for want_tiles in (min_tiles, 2, 1):
        for cand in candidates:
            if cand <= max_rows_by_vmem and rows % cand == 0 and rows // cand >= want_tiles:
                return cand
    return min_rows  # rows is a multiple of min_rows by construction


def identity_decision_layer_forward(x, input_dim=1, materialize=False, donate_input=False):
    """Pallas equivalent of IdentityDecisionLayer(input_dim).forward(x).

    Semantics: identity followed by torch-style .squeeze() (drop all size-1 dims).

    Default path is metadata-only (no kernel, no HBM traffic).  Set
    materialize=True to force an explicit Pallas HBM->HBM copy (e.g. when a
    fresh, optionally donated buffer is required).  Note that
    input_output_aliases only removes the extra HBM allocation when the
    enclosing jax.jit also donates `x` (donate_argnums); it never reduces the
    2x copy traffic.
    """
    del input_dim  # output_dim == input_dim; identity does not consume it.
    x = jnp.asarray(x)

    if not materialize:
        # Identity + squeeze needs no data movement at all.
        return jnp.squeeze(x)

    total = x.size
    itemsize = jnp.dtype(x.dtype).itemsize
    min_rows = _min_rows_for_dtype(x.dtype)
    factorization = _choose_flat_shape(total, min_rows) if total > 0 else None
    if factorization is None or total < min_rows * 128:
        # Too small / non-tileable for a lane-dense slab: layout-only path.
        return jnp.squeeze(x)

    rows, lane = factorization
    gen = _tpu_generation()
    max_block_bytes, vmem_limit = _block_budget(gen)
    min_tiles = 4 if gen == "v7" else 2
    block_rows = _choose_block_rows(rows, lane, itemsize, min_rows,
                                    max_block_bytes, min_tiles)

    flat = x.reshape(rows, lane)  # lane-dense: last dim is a multiple of 128

    cp_kwargs = {"dimension_semantics": ("parallel",)}  # v7x: both TCs stream tiles
    if vmem_limit is not None:
        cp_kwargs["vmem_limit_bytes"] = vmem_limit

    out_flat = pl.pallas_call(
        _identity_copy_kernel,
        out_shape=jax.ShapeDtypeStruct((rows, lane), flat.dtype),
        grid=(rows // block_rows,),
        in_specs=[pl.BlockSpec((block_rows, lane), lambda i: (i, 0))],
        out_specs=pl.BlockSpec((block_rows, lane), lambda i: (i, 0)),
        compiler_params=pltpu.CompilerParams(**cp_kwargs),
        cost_estimate=pl.CostEstimate(
            flops=0, transcendentals=0, bytes_accessed=2 * total * itemsize),
        input_output_aliases=({0: 0} if donate_input else {}),
    )(flat)

    out = out_flat.reshape(x.shape)
    # torch .squeeze(): drop all size-1 dimensions (shape glue, not compute).
    return jnp.squeeze(out)


if __name__ == "__main__":
    key = jax.random.PRNGKey(0)

    # Default (metadata-only) path: input_dim=1 -> trailing size-1 feature dim.
    x = jax.random.normal(key, (2, 4, 16, 16, 1), dtype=jnp.float32)
    y = jax.block_until_ready(identity_decision_layer_forward(x, input_dim=1))
    ref = jnp.squeeze(x)
    assert y.shape == ref.shape == (2, 4, 16, 16), y.shape
    assert jnp.array_equal(y, ref)

    # Pallas copy path (materialize=True): explicit HBM->HBM identity copy.
    y_mat = jax.block_until_ready(
        identity_decision_layer_forward(x, input_dim=1, materialize=True))
    assert y_mat.shape == (2, 4, 16, 16), y_mat.shape
    assert jnp.array_equal(y_mat, ref)

    # bf16 exercises dtype-scaled minimum row tiles (>=16 sublanes) + multi-tile grid.
    x_bf16 = jax.random.normal(jax.random.PRNGKey(1), (8, 32, 128, 1), dtype=jnp.bfloat16)
    y_bf16 = jax.block_until_ready(
        identity_decision_layer_forward(x_bf16, materialize=True))
    assert y_bf16.shape == (8, 32, 128), y_bf16.shape
    assert jnp.array_equal(y_bf16, jnp.squeeze(x_bf16))

    # Tiny / non-tileable input stays on the layout-only path (no kernel).
    x_small = jax.random.normal(jax.random.PRNGKey(2), (2, 3, 1), dtype=jnp.float32)
    y_small = jax.block_until_ready(identity_decision_layer_forward(x_small))
    assert y_small.shape == (2, 3), y_small.shape
    assert jnp.array_equal(y_small, jnp.squeeze(x_small))

    print("KERNEL_OK")
</pallas_src>

<mosaic_0001>
module attributes {stable_mosaic.version = 11 : i64} {
  func.func @_identity_copy_kernel(%arg0: i32, %arg1: memref<8x256xf32, #tpu.memory_space<vmem>>, %arg2: memref<8x256xf32, #tpu.memory_space<vmem>>) attributes {dimension_semantics = [#tpu.dimension_semantics<parallel>], iteration_bounds = array<i64: 1>, scalar_prefetch = 0 : i64, scratch_operands = 0 : i64, tpu.core_type = #tpu.core_type<tc>, window_params = [{transform_indices = @transform_0, window_bounds = array<i64: 8, 256>}, {transform_indices = @transform_1, window_bounds = array<i64: 8, 256>}]} {
    %c0 = arith.constant 0 : index
    %c0_0 = arith.constant 0 : index
    %0 = vector.load %arg1[%c0, %c0_0] : memref<8x256xf32, #tpu.memory_space<vmem>>, vector<8x256xf32>
    %c0_1 = arith.constant 0 : index
    %c0_2 = arith.constant 0 : index
    %1 = vector.load %arg2[%c0_1, %c0_2] : memref<8x256xf32, #tpu.memory_space<vmem>>, vector<8x256xf32>
    tpu.vector_store %arg2[%c0_1, %c0_2], %0 {strides = array<i32>} : memref<8x256xf32, #tpu.memory_space<vmem>>, vector<8x256xf32>,
    return
  }
  func.func @transform_0(%arg0: i32) -> (i32, i32) {
    %c0_i32 = arith.constant 0 : i32
    %c0_i32_0 = arith.constant 0 : i32
    return %arg0, %c0_i32 : i32, i32
  }
  func.func @transform_1(%arg0: i32) -> (i32, i32) {
    %c0_i32 = arith.constant 0 : i32
    %c0_i32_0 = arith.constant 0 : i32
    return %arg0, %c0_i32 : i32, i32
  }
}

</mosaic_0001>

<bundles_post_ra>
// kernel: tpu_custom_call.1
= control target key start
LH: loop header
LB: loop body
LE: loop exit
PB: predicated region body
PF: predicated region fallthrough
CT: control target
= control target key end

     0   :  { %6 = vsyncpa [#allocation3], 0  ;;  %s126_s0 = inlined_call_operand.hbm [shape: f32[8,256], index: 0, kind: input, shape index: {}]   ;;  %s127_s1 = inlined_call_operand.hbm [shape: f32[8,256], index: 1, kind: output, shape index: {}]  }
   0x1   :  { %7 = vsyncpa [#allocation4], 0  ;;  %s90_s6 = smov [#allocation2]   ;;  %s42_s10 = scalar_lea.hbm %s126_s0, 256 }
   0x2   :  { %s14_s7 = sshll.u32 %s90_s6, 4  ;;  %p43_p0 = scmp.ne.s32.totalorder %s126_s0, %s42_s10  ;;  %s15_s7 = int_to_ptr.vmem [resolvable:$true] %s14_s7 }
   0x3   :  { %p46_p1 = scmp.lt.u32.totalorder %s42_s10, %s126_s0 }
   0x5   :  { %p48_p2 = pnand %p46_p1, %p43_p0 }
   0x7   :  { %51 = shalt.err (!%p48_p2)
}
   0x8   :  { %s52_s15 = scalar_lea.vmem %s15_s7, 256  ;;  %p57_p4 = scmp.lt.s32.totalorder %s15_s7, %s15_s7 }
   0x9   :  { %p53_p3 = scmp.ne.s32.totalorder %s15_s7, %s52_s15  ;;  %p58_p5 = scmp.lt.s32.totalorder %s52_s15, %s52_s15 }
   0xb   :  { %p59_p6 = por %p58_p5, %p57_p4 }
   0xd   :  { %p60_p7 = pnand %p59_p6, %p53_p3 }
   0xf   :  { %63 = shalt.err (!%p60_p7)
}
  0x10   :  { %17 = dma.hbm_to_vmem [thread:$0]  %s126_s0, 256, %s15_s7, [#allocation3]  }
  0x11   :  { %86 = dma.done.wait [#allocation3], 256  }
  0x12   :  { %87 = vsyncadd [#allocation3], 4294967040  ;;  %s91_s18 = smov [#allocation5]   ;;  %v21_v0 = vld [vmem:[#allocation2] sm:$0xff]  ;;  %v22_v1 = vld [vmem:[#allocation2 + $0x8] sm:$0xff] }
  0x13   :  { %s31_s19 = sshll.u32 %s91_s18, 4  ;;  %23 = vst [vmem:[#allocation5] sm:$0xff] %v21_v0  ;;  %24 = vst [vmem:[#allocation5 + $0x8] sm:$0xff] %v22_v1  ;;  %s32_s19 = int_to_ptr.vmem [resolvable:$true] %s31_s19 }
  0x14   :  { %s64_s20 = scalar_lea.vmem %s32_s19, 256  ;;  %p69_p9 = scmp.lt.s32.totalorder %s32_s19, %s32_s19 }
  0x15   :  { %p65_p8 = scmp.ne.s32.totalorder %s32_s19, %s64_s20  ;;  %p70_p10 = scmp.lt.s32.totalorder %s64_s20, %s64_s20 }
  0x17   :  { %p71_p11 = por %p70_p10, %p69_p9 }
  0x19   :  { %p72_p12 = pnand %p71_p11, %p65_p8 }
  0x1b   :  { %75 = shalt.err (!%p72_p12)
}
  0x1c   :  { %s76_s0 = scalar_lea.hbm %s127_s1, 256 }
  0x1d   :  { %p77_p13 = scmp.ne.s32.totalorder %s127_s1, %s76_s0  ;;  %p80_p0 = scmp.lt.u32.totalorder %s76_s0, %s127_s1 }
  0x1f   :  { %p82_p1 = pnand %p80_p0, %p77_p13 }
  0x21   :  { %85 = shalt.err (!%p82_p1)
}
  0x22   :  { %34 = dma.vmem_to_hbm [thread:$0]  %s32_s19, 256, %s127_s1, [#allocation4]  }
  0x23   :  { %88 = dma.done.wait [#allocation4], 256  }
  0x24   :  { %89 = vsyncadd [#allocation4], 4294967040 }
  0x25   :  { %38 = vsyncpa [#allocation3], 1 }
  0x26   :  { %39 = vsyncpa [#allocation4], 1 }

</bundles_post_ra>
